<compile_context>
chip_gen: v6e
topology: v6e:2x2x1
jax: 0.10.0
libtpu: 0.0.40
codegen_flags: <defaults>
</compile_context>

<pallas_src>
import functools

import jax
import jax.numpy as jnp
from jax.experimental import pallas as pl
from jax.experimental.pallas import tpu as pltpu

LANE = 128
BBLK = 8          # batch rows per grid step (one full sublane tile)


def _round_up(x, m):
    return (x + m - 1) // m * m


# ------------------------------ fused kernel ----------------------------------

def _fused_forward_kernel(x_ref, z_ref,
                          ew1_ref, eb1_ref, ew2_ref, eb2_ref,
                          dw1_ref, db1_ref, dw2_ref, db2_ref,
                          c1w_ref, c1b_ref, c2w_ref, c2b_ref,
                          num_ref, img_ref, *, use_label):
    """Whole GanForMinist forward for one batch block.

      x:(BBLK,Ein)  z:(BBLK,128)      ew1:(Ein,128) ew2:(128,128)
      dw1:(128,128) dw2:(128,Fp)      c1w:(Fp,N1p)  c2w:(N1p,N2p)
      biases:(1,·)  num:(BBLK,128)    img:(BBLK,N2p)

    Every operand is lane-dense (all feature dims padded to multiples of 128 at
    weight-prep time with zero columns/rows, so the padding is inert).
    """
    f32 = jnp.float32

    # --- encoder: flatten -> Linear -> ReLU -> Linear ---
    h = jnp.dot(x_ref[...], ew1_ref[...], preferred_element_type=f32) + eb1_ref[...]
    h = jnp.maximum(h, 0.0)
    numbers = jnp.dot(h, ew2_ref[...], preferred_element_type=f32) + eb2_ref[...]
    num_ref[...] = numbers

    # --- decoder fcs: Linear -> ReLU -> Linear -> ReLU ---
    z = z_ref[...] if use_label else numbers
    g = jnp.dot(z, dw1_ref[...], preferred_element_type=f32) + db1_ref[...]
    g = jnp.maximum(g, 0.0)
    flat = jnp.dot(g, dw2_ref[...], preferred_element_type=f32) + db2_ref[...]
    flat = jnp.maximum(flat, 0.0)                      # (BBLK, Fp), NCHW flatten order

    # --- ConvTranspose2d #1 + ReLU (precomputed dense operator, batch in M) ---
    y1 = jnp.dot(flat, c1w_ref[...], preferred_element_type=f32) + c1b_ref[...]
    y1 = jnp.maximum(y1, 0.0)                          # (BBLK, N1p)

    # --- ConvTranspose2d #2 + Sigmoid (lane-dense (BBLK, OH*OW) output) ---
    logits = jnp.dot(y1, c2w_ref[...], preferred_element_type=f32) + c2b_ref[...]
    # exp and approx reciprocal both run on the EUP (otherwise-idle slot); the
    # clip guards the small approx error so outputs stay exactly in [0, 1].
    img = pl.reciprocal(1.0 + jnp.exp(-logits), approx=True)
    img_ref[...] = jnp.clip(img, 0.0, 1.0)


# ------------------------------- pallas wrapper --------------------------------

def _fused_call(kp, x2d, z, *, use_label):
    Bp, enc_in_p = x2d.shape
    Fp = kp["dec_w2"].shape[1]
    N1p = kp["dc1_w"].shape[1]
    N2p = kp["dc2_w"].shape[1]
    grid = (Bp // BBLK,)

    def row_spec(n):
        return pl.BlockSpec((BBLK, n), lambda b: (b, 0))

    def full_spec(shape):
        return pl.BlockSpec(shape, lambda b: (0,) * len(shape))

    return pl.pallas_call(
        functools.partial(_fused_forward_kernel, use_label=use_label),
        out_shape=(jax.ShapeDtypeStruct((Bp, LANE), jnp.float32),
                   jax.ShapeDtypeStruct((Bp, N2p), jnp.float32)),
        grid=grid,
        in_specs=[
            row_spec(enc_in_p),                                   # x (flattened data)
            row_spec(LANE),                                       # z (label, padded)
            full_spec((enc_in_p, LANE)), full_spec((1, LANE)),    # encoder fc1
            full_spec((LANE, LANE)), full_spec((1, LANE)),        # encoder fc2
            full_spec((LANE, LANE)), full_spec((1, LANE)),        # decoder fc1
            full_spec((LANE, Fp)), full_spec((1, Fp)),            # decoder fc2
            full_spec((Fp, N1p)), full_spec((1, N1p)),            # deconv1 operator
            full_spec((N1p, N2p)), full_spec((1, N2p)),           # deconv2 operator
        ],
        out_specs=(row_spec(LANE), row_spec(N2p)),
        compiler_params=pltpu.CompilerParams(
            dimension_semantics=("parallel",)),                   # batch blocks -> v7x TCs
    )(x2d, z,
      kp["enc_w1"], kp["enc_b1"], kp["enc_w2"], kp["enc_b2"],
      kp["dec_w1"], kp["dec_b1"], kp["dec_w2"], kp["dec_b2"],
      kp["dc1_w"], kp["dc1_b"], kp["dc2_w"], kp["dc2_b"])


# ------------------------- params + one-time weight repack ---------------------

def init_params(key, in_channel, hidden_channel, img_channel, H, W):
    """Raw parameters (Linear as (in,out); ConvTranspose2d as (Cin,Cout,KH,KW))."""
    img_shape = (img_channel, H // 4, W // 4)
    flatten_dim = img_channel * (H // 4) * (W // 4)
    ks = jax.random.split(key, 12)
    s = 0.05
    enc_in = in_channel * H * W
    return {
        # TODO(synk): `NetWork` encoder source was not provided; synthesized as
        # flatten -> Linear(C*H*W,128) -> ReLU -> Linear(128,10), matching the
        # required interface (numbers in R^{Bx10}, img_shape, flatten_dim).
        "enc_w1": jax.random.normal(ks[0], (enc_in, 128), jnp.float32) * s,
        "enc_b1": jax.random.normal(ks[1], (128,), jnp.float32) * s,
        "enc_w2": jax.random.normal(ks[2], (128, 10), jnp.float32) * s,
        "enc_b2": jax.random.normal(ks[3], (10,), jnp.float32) * s,
        # DecodeFromNum.fcs
        "dec_w1": jax.random.normal(ks[4], (10, 128), jnp.float32) * s,
        "dec_b1": jax.random.normal(ks[5], (128,), jnp.float32) * s,
        "dec_w2": jax.random.normal(ks[6], (128, flatten_dim), jnp.float32) * s,
        "dec_b2": jax.random.normal(ks[7], (flatten_dim,), jnp.float32) * s,
        # DecodeFromNum.anti_convs
        "ct1_w": jax.random.normal(ks[8], (img_channel, hidden_channel, 3, 3), jnp.float32) * s,
        "ct1_b": jax.random.normal(ks[9], (hidden_channel,), jnp.float32) * s,
        "ct2_w": jax.random.normal(ks[10], (hidden_channel, 1, 3, 3), jnp.float32) * s,
        "ct2_b": jax.random.normal(ks[11], (1,), jnp.float32) * s,
        "img_shape": img_shape,
    }


def _deconv_ref(x, w_t, b, *, stride=2, padding=1, output_padding=1):
    """Direct PyTorch ConvTranspose2d definition (used both to build the dense
    operators at prep time and to validate):
       out[:, co, s*iy - p + kh, s*ix - p + kw] += x[:, ci, iy, ix] * w[ci, co, kh, kw]."""
    B, Cin, H, W = x.shape
    _, Cout, KH, KW = w_t.shape
    OH = (H - 1) * stride - 2 * padding + KH + output_padding
    OW = (W - 1) * stride - 2 * padding + KW + output_padding
    canvas = jnp.zeros((B, Cout, OH + 2 * padding, OW + 2 * padding), x.dtype)
    for kh in range(KH):
        for kw in range(KW):
            contrib = jnp.einsum("bihw,io->bohw", x, w_t[:, :, kh, kw])
            canvas = canvas.at[:, :, kh:kh + stride * H:stride,
                               kw:kw + stride * W:stride].add(contrib)
    out = canvas[:, :, padding:padding + OH, padding:padding + OW]
    return out + b.reshape(1, Cout, 1, 1)


def prepare_params(p):
    """One-time repack: pad all feature dims to 128-lane multiples with zeros and
    fold each ConvTranspose2d into its exact dense linear operator (built by
    pushing the NCHW identity basis through the reference deconv)."""
    C, h, w = p["img_shape"]
    hidden1 = p["ct1_w"].shape[1]
    flatten_dim = C * h * w
    enc_in = p["enc_w1"].shape[0]
    enc_in_p = _round_up(enc_in, LANE)
    Fp = _round_up(flatten_dim, LANE)

    n1 = hidden1 * (2 * h) * (2 * w)          # deconv1 output size per sample
    n2 = 1 * (4 * h) * (4 * w)                # deconv2 output size per sample
    N1p = _round_up(n1, LANE)
    N2p = _round_up(n2, LANE)

    # Dense operator for ConvTranspose2d #1 : (flatten_dim NCHW) -> (n1 NCHW).
    eye1 = jnp.eye(flatten_dim, dtype=jnp.float32).reshape(flatten_dim, C, h, w)
    op1 = _deconv_ref(eye1, p["ct1_w"], jnp.zeros((hidden1,), jnp.float32)
                      ).reshape(flatten_dim, n1)
    b1 = jnp.broadcast_to(p["ct1_b"].reshape(hidden1, 1, 1),
                          (hidden1, 2 * h, 2 * w)).reshape(1, n1)

    # Dense operator for ConvTranspose2d #2 : (n1 NCHW) -> (n2 = OH*OW row-major).
    eye2 = jnp.eye(n1, dtype=jnp.float32).reshape(n1, hidden1, 2 * h, 2 * w)
    op2 = _deconv_ref(eye2, p["ct2_w"], jnp.zeros((1,), jnp.float32)
                      ).reshape(n1, n2)
    b2 = jnp.broadcast_to(p["ct2_b"].reshape(1, 1, 1), (1, 4 * h, 4 * w)).reshape(1, n2)

    def pad2(a, rows, cols):
        return jnp.pad(a, ((0, rows - a.shape[0]), (0, cols - a.shape[1])))

    return {
        "enc_w1": pad2(p["enc_w1"], enc_in_p, LANE),
        "enc_b1": pad2(p["enc_b1"].reshape(1, -1), 1, LANE),
        "enc_w2": pad2(p["enc_w2"], LANE, LANE),
        "enc_b2": pad2(p["enc_b2"].reshape(1, -1), 1, LANE),
        "dec_w1": pad2(p["dec_w1"], LANE, LANE),
        "dec_b1": pad2(p["dec_b1"].reshape(1, -1), 1, LANE),
        "dec_w2": pad2(p["dec_w2"], LANE, Fp),
        "dec_b2": pad2(p["dec_b2"].reshape(1, -1), 1, Fp),
        "dc1_w": pad2(op1, Fp, N1p),
        "dc1_b": pad2(b1, 1, N1p),
        "dc2_w": pad2(op2, N1p, N2p),
        "dc2_b": pad2(b2, 1, N2p),
        "enc_in_p": enc_in_p,
        "img_shape": (C, h, w),
        "out_hw": (4 * h, 4 * w),
    }


# ---------------------------------- forward ------------------------------------

def gan_for_minist_forward(kp, data, label=None):
    """data: (B, C, H, W) NCHW; label: optional (B, 10).
    Returns (numbers:(B,10), fake_images:(B,1,H,W))."""
    B = data.shape[0]
    Bp = _round_up(B, BBLK)                   # fill whole sublane tiles

    x2d = data.reshape(B, -1).astype(jnp.float32)
    x2d = jnp.pad(x2d, ((0, Bp - B), (0, kp["enc_in_p"] - x2d.shape[1])))
    if label is None:
        z = jnp.zeros((Bp, LANE), jnp.float32)        # ignored by the kernel
        use_label = False
    else:
        lbl = jnp.asarray(label, jnp.float32)
        z = jnp.pad(lbl, ((0, Bp - B), (0, LANE - lbl.shape[1])))
        use_label = True

    numbers_p, img_p = _fused_call(kp, x2d, z, use_label=use_label)

    numbers = numbers_p[:B, :10]
    OH, OW = kp["out_hw"]
    fake_images = img_p[:B, :OH * OW].reshape(B, 1, OH, OW)
    return numbers, fake_images


# ---------------------------- plain-JAX reference -------------------------------

def _reference_forward(p, data, label=None):
    B = data.shape[0]
    x = data.reshape(B, -1)
    h = jnp.maximum(x @ p["enc_w1"] + p["enc_b1"], 0.0)
    numbers = h @ p["enc_w2"] + p["enc_b2"]
    z = numbers if label is None else label
    g = jnp.maximum(z @ p["dec_w1"] + p["dec_b1"], 0.0)
    flat = jnp.maximum(g @ p["dec_w2"] + p["dec_b2"], 0.0)
    C, hh, ww = p["img_shape"]
    imgs = flat.reshape(B, C, hh, ww)
    y1 = jnp.maximum(_deconv_ref(imgs, p["ct1_w"], p["ct1_b"]), 0.0)
    y2 = jax.nn.sigmoid(_deconv_ref(y1, p["ct2_w"], p["ct2_b"]))
    return numbers, y2


# ------------------------------------ main --------------------------------------

if __name__ == "__main__":
    B, in_channel, hidden_channel, img_channel = 2, 1, 4, 4
    H = W = 16

    key = jax.random.PRNGKey(0)
    k_params, k_data = jax.random.split(key)
    raw = init_params(k_params, in_channel, hidden_channel, img_channel, H, W)
    params = prepare_params(raw)
    data = jax.random.normal(k_data, (B, in_channel, H, W), jnp.float32)
    label = jax.nn.one_hot(jnp.arange(B) % 10, 10, dtype=jnp.float32)

    # Path 1: decode from the encoder's own numbers (label=None).
    fwd = jax.jit(lambda d: gan_for_minist_forward(params, d))
    numbers, fake_images = fwd(data)
    jax.block_until_ready((numbers, fake_images))

    assert numbers.shape == (B, 10)
    assert fake_images.shape == (B, 1, H, W)
    assert bool(jnp.all(jnp.isfinite(numbers)))
    assert bool(jnp.all((fake_images >= 0.0) & (fake_images <= 1.0)))

    ref_numbers, ref_images = _reference_forward(raw, data)
    assert bool(jnp.allclose(numbers, ref_numbers, atol=5e-3, rtol=1e-2)), \
        float(jnp.max(jnp.abs(numbers - ref_numbers)))
    assert bool(jnp.allclose(fake_images, ref_images, atol=1e-2, rtol=0.0)), \
        float(jnp.max(jnp.abs(fake_images - ref_images)))

    # Path 2: decode from a provided label.
    fwd_lbl = jax.jit(lambda d, l: gan_for_minist_forward(params, d, l))
    numbers_l, fake_images_l = fwd_lbl(data, label)
    jax.block_until_ready((numbers_l, fake_images_l))
    ref_numbers_l, ref_images_l = _reference_forward(raw, data, label)
    assert bool(jnp.allclose(numbers_l, ref_numbers_l, atol=5e-3, rtol=1e-2))
    assert bool(jnp.allclose(fake_images_l, ref_images_l, atol=1e-2, rtol=0.0)), \
        float(jnp.max(jnp.abs(fake_images_l - ref_images_l)))

    print("KERNEL_OK")
</pallas_src>

<mosaic_0001>
module attributes {stable_mosaic.version = 11 : i64} {
  func.func @_fused_forward_kernel(%arg0: i32, %arg1: memref<8x256xf32, #tpu.memory_space<vmem>>, %arg2: memref<8x128xf32, #tpu.memory_space<vmem>>, %arg3: memref<256x128xf32, #tpu.memory_space<vmem>>, %arg4: memref<1x128xf32, #tpu.memory_space<vmem>>, %arg5: memref<128x128xf32, #tpu.memory_space<vmem>>, %arg6: memref<1x128xf32, #tpu.memory_space<vmem>>, %arg7: memref<128x128xf32, #tpu.memory_space<vmem>>, %arg8: memref<1x128xf32, #tpu.memory_space<vmem>>, %arg9: memref<128x128xf32, #tpu.memory_space<vmem>>, %arg10: memref<1x128xf32, #tpu.memory_space<vmem>>, %arg11: memref<128x256xf32, #tpu.memory_space<vmem>>, %arg12: memref<1x256xf32, #tpu.memory_space<vmem>>, %arg13: memref<256x256xf32, #tpu.memory_space<vmem>>, %arg14: memref<1x256xf32, #tpu.memory_space<vmem>>, %arg15: memref<8x128xf32, #tpu.memory_space<vmem>>, %arg16: memref<8x256xf32, #tpu.memory_space<vmem>>) attributes {dimension_semantics = [#tpu.dimension_semantics<parallel>], iteration_bounds = array<i64: 1>, scalar_prefetch = 0 : i64, scratch_operands = 0 : i64, tpu.core_type = #tpu.core_type<tc>, window_params = [{transform_indices = @transform_0, window_bounds = array<i64: 8, 256>}, {transform_indices = @transform_1, window_bounds = array<i64: 8, 128>}, {pipeline_mode = #tpu.pipeline_mode<synchronous>, transform_indices = @transform_2, window_bounds = array<i64: 256, 128>}, {pipeline_mode = #tpu.pipeline_mode<synchronous>, transform_indices = @transform_3, window_bounds = array<i64: 1, 128>}, {pipeline_mode = #tpu.pipeline_mode<synchronous>, transform_indices = @transform_4, window_bounds = array<i64: 128, 128>}, {pipeline_mode = #tpu.pipeline_mode<synchronous>, transform_indices = @transform_5, window_bounds = array<i64: 1, 128>}, {pipeline_mode = #tpu.pipeline_mode<synchronous>, transform_indices = @transform_6, window_bounds = array<i64: 128, 128>}, {pipeline_mode = #tpu.pipeline_mode<synchronous>, transform_indices = @transform_7, window_bounds = array<i64: 1, 128>}, {pipeline_mode = #tpu.pipeline_mode<synchronous>, transform_indices = @transform_8, window_bounds = array<i64: 128, 128>}, {pipeline_mode = #tpu.pipeline_mode<synchronous>, transform_indices = @transform_9, window_bounds = array<i64: 1, 128>}, {pipeline_mode = #tpu.pipeline_mode<synchronous>, transform_indices = @transform_10, window_bounds = array<i64: 128, 256>}, {pipeline_mode = #tpu.pipeline_mode<synchronous>, transform_indices = @transform_11, window_bounds = array<i64: 1, 256>}, {pipeline_mode = #tpu.pipeline_mode<synchronous>, transform_indices = @transform_12, window_bounds = array<i64: 256, 256>}, {pipeline_mode = #tpu.pipeline_mode<synchronous>, transform_indices = @transform_13, window_bounds = array<i64: 1, 256>}, {transform_indices = @transform_14, window_bounds = array<i64: 8, 128>}, {transform_indices = @transform_15, window_bounds = array<i64: 8, 256>}]} {
    %c0 = arith.constant 0 : index
    %c0_0 = arith.constant 0 : index
    %0 = vector.load %arg1[%c0, %c0_0] : memref<8x256xf32, #tpu.memory_space<vmem>>, vector<8x256xf32>
    %c0_1 = arith.constant 0 : index
    %c0_2 = arith.constant 0 : index
    %1 = vector.load %arg3[%c0_1, %c0_2] : memref<256x128xf32, #tpu.memory_space<vmem>>, vector<256x128xf32>
    %cst = arith.constant dense<0.000000e+00> : vector<8x128xf32>
    %2 = tpu.matmul %0, %1, %cst {dimension_numbers = #tpu.dot_dimension_numbers<[1], [0], [0], [1], [0, 0, 1, 1], [], []>} : vector<8x256xf32>, vector<256x128xf32>, vector<8x128xf32> -> vector<8x128xf32>
    %c0_3 = arith.constant 0 : index
    %c0_4 = arith.constant 0 : index
    %3 = vector.load %arg4[%c0_3, %c0_4] : memref<1x128xf32, #tpu.memory_space<vmem>>, vector<1x128xf32>
    %4 = vector.broadcast %3 : vector<1x128xf32> to vector<8x128xf32>
    %5 = arith.addf %2, %4 : vector<8x128xf32>
    %cst_5 = arith.constant 0.000000e+00 : f32
    %6 = vector.broadcast %cst_5 : f32 to vector<8x128xf32>
    %7 = arith.maximumf %5, %6 : vector<8x128xf32>
    %c0_6 = arith.constant 0 : index
    %c0_7 = arith.constant 0 : index
    %8 = vector.load %arg5[%c0_6, %c0_7] : memref<128x128xf32, #tpu.memory_space<vmem>>, vector<128x128xf32>
    %cst_8 = arith.constant dense<0.000000e+00> : vector<8x128xf32>
    %9 = tpu.matmul %7, %8, %cst_8 {dimension_numbers = #tpu.dot_dimension_numbers<[1], [0], [0], [1], [0, 0, 1, 1], [], []>} : vector<8x128xf32>, vector<128x128xf32>, vector<8x128xf32> -> vector<8x128xf32>
    %c0_9 = arith.constant 0 : index
    %c0_10 = arith.constant 0 : index
    %10 = vector.load %arg6[%c0_9, %c0_10] : memref<1x128xf32, #tpu.memory_space<vmem>>, vector<1x128xf32>
    %11 = vector.broadcast %10 : vector<1x128xf32> to vector<8x128xf32>
    %12 = arith.addf %9, %11 : vector<8x128xf32>
    %c0_11 = arith.constant 0 : index
    %c0_12 = arith.constant 0 : index
    %13 = vector.load %arg15[%c0_11, %c0_12] : memref<8x128xf32, #tpu.memory_space<vmem>>, vector<8x128xf32>
    tpu.vector_store %arg15[%c0_11, %c0_12], %12 {strides = array<i32>} : memref<8x128xf32, #tpu.memory_space<vmem>>, vector<8x128xf32>,
    %c0_13 = arith.constant 0 : index
    %c0_14 = arith.constant 0 : index
    %14 = vector.load %arg7[%c0_13, %c0_14] : memref<128x128xf32, #tpu.memory_space<vmem>>, vector<128x128xf32>
    %cst_15 = arith.constant dense<0.000000e+00> : vector<8x128xf32>
    %15 = tpu.matmul %12, %14, %cst_15 {dimension_numbers = #tpu.dot_dimension_numbers<[1], [0], [0], [1], [0, 0, 1, 1], [], []>} : vector<8x128xf32>, vector<128x128xf32>, vector<8x128xf32> -> vector<8x128xf32>
    %c0_16 = arith.constant 0 : index
    %c0_17 = arith.constant 0 : index
    %16 = vector.load %arg8[%c0_16, %c0_17] : memref<1x128xf32, #tpu.memory_space<vmem>>, vector<1x128xf32>
    %17 = vector.broadcast %16 : vector<1x128xf32> to vector<8x128xf32>
    %18 = arith.addf %15, %17 : vector<8x128xf32>
    %cst_18 = arith.constant 0.000000e+00 : f32
    %19 = vector.broadcast %cst_18 : f32 to vector<8x128xf32>
    %20 = arith.maximumf %18, %19 : vector<8x128xf32>
    %c0_19 = arith.constant 0 : index
    %c0_20 = arith.constant 0 : index
    %21 = vector.load %arg9[%c0_19, %c0_20] : memref<128x128xf32, #tpu.memory_space<vmem>>, vector<128x128xf32>
    %cst_21 = arith.constant dense<0.000000e+00> : vector<8x128xf32>
    %22 = tpu.matmul %20, %21, %cst_21 {dimension_numbers = #tpu.dot_dimension_numbers<[1], [0], [0], [1], [0, 0, 1, 1], [], []>} : vector<8x128xf32>, vector<128x128xf32>, vector<8x128xf32> -> vector<8x128xf32>
    %c0_22 = arith.constant 0 : index
    %c0_23 = arith.constant 0 : index
    %23 = vector.load %arg10[%c0_22, %c0_23] : memref<1x128xf32, #tpu.memory_space<vmem>>, vector<1x128xf32>
    %24 = vector.broadcast %23 : vector<1x128xf32> to vector<8x128xf32>
    %25 = arith.addf %22, %24 : vector<8x128xf32>
    %cst_24 = arith.constant 0.000000e+00 : f32
    %26 = vector.broadcast %cst_24 : f32 to vector<8x128xf32>
    %27 = arith.maximumf %25, %26 : vector<8x128xf32>
    %c0_25 = arith.constant 0 : index
    %c0_26 = arith.constant 0 : index
    %28 = vector.load %arg11[%c0_25, %c0_26] : memref<128x256xf32, #tpu.memory_space<vmem>>, vector<128x256xf32>
    %cst_27 = arith.constant dense<0.000000e+00> : vector<8x256xf32>
    %29 = tpu.matmul %27, %28, %cst_27 {dimension_numbers = #tpu.dot_dimension_numbers<[1], [0], [0], [1], [0, 0, 1, 1], [], []>} : vector<8x128xf32>, vector<128x256xf32>, vector<8x256xf32> -> vector<8x256xf32>
    %c0_28 = arith.constant 0 : index
    %c0_29 = arith.constant 0 : index
    %30 = vector.load %arg12[%c0_28, %c0_29] : memref<1x256xf32, #tpu.memory_space<vmem>>, vector<1x256xf32>
    %31 = vector.broadcast %30 : vector<1x256xf32> to vector<8x256xf32>
    %32 = arith.addf %29, %31 : vector<8x256xf32>
    %cst_30 = arith.constant 0.000000e+00 : f32
    %33 = vector.broadcast %cst_30 : f32 to vector<8x256xf32>
    %34 = arith.maximumf %32, %33 : vector<8x256xf32>
    %c0_31 = arith.constant 0 : index
    %c0_32 = arith.constant 0 : index
    %35 = vector.load %arg13[%c0_31, %c0_32] : memref<256x256xf32, #tpu.memory_space<vmem>>, vector<256x256xf32>
    %cst_33 = arith.constant dense<0.000000e+00> : vector<8x256xf32>
    %36 = tpu.matmul %34, %35, %cst_33 {dimension_numbers = #tpu.dot_dimension_numbers<[1], [0], [0], [1], [0, 0, 1, 1], [], []>} : vector<8x256xf32>, vector<256x256xf32>, vector<8x256xf32> -> vector<8x256xf32>
    %c0_34 = arith.constant 0 : index
    %c0_35 = arith.constant 0 : index
    %37 = vector.load %arg14[%c0_34, %c0_35] : memref<1x256xf32, #tpu.memory_space<vmem>>, vector<1x256xf32>
    %38 = vector.broadcast %37 : vector<1x256xf32> to vector<8x256xf32>
    %39 = arith.addf %36, %38 : vector<8x256xf32>
    %cst_36 = arith.constant 0.000000e+00 : f32
    %40 = vector.broadcast %cst_36 : f32 to vector<8x256xf32>
    %41 = arith.subf %40, %39 : vector<8x256xf32>
    %42 = math.exp %41 : vector<8x256xf32>
    %cst_37 = arith.constant 1.000000e+00 : f32
    %43 = vector.broadcast %cst_37 : f32 to vector<8x256xf32>
    %44 = arith.addf %43, %42 : vector<8x256xf32>
    %45 = tpu.reciprocal %44 {approx = true} : vector<8x256xf32> -> vector<8x256xf32>
    %cst_38 = arith.constant 0.000000e+00 : f32
    %cst_39 = arith.constant 1.000000e+00 : f32
    %46 = vector.broadcast %cst_38 : f32 to vector<8x256xf32>
    %47 = arith.maximumf %46, %45 : vector<8x256xf32>
    %48 = vector.broadcast %cst_39 : f32 to vector<8x256xf32>
    %49 = arith.minimumf %48, %47 : vector<8x256xf32>
    %c0_40 = arith.constant 0 : index
    %c0_41 = arith.constant 0 : index
    %50 = vector.load %arg16[%c0_40, %c0_41] : memref<8x256xf32, #tpu.memory_space<vmem>>, vector<8x256xf32>
    tpu.vector_store %arg16[%c0_40, %c0_41], %49 {strides = array<i32>} : memref<8x256xf32, #tpu.memory_space<vmem>>, vector<8x256xf32>,
    return
  }
  func.func @transform_0(%arg0: i32) -> (i32, i32) {
    %c0_i32 = arith.constant 0 : i32
    %c0_i32_0 = arith.constant 0 : i32
    return %arg0, %c0_i32 : i32, i32
  }
  func.func @transform_1(%arg0: i32) -> (i32, i32) {
    %c0_i32 = arith.constant 0 : i32
    %c0_i32_0 = arith.constant 0 : i32
    return %arg0, %c0_i32 : i32, i32
  }
  func.func @transform_2(%arg0: i32) -> (i32, i32) {
    %c0_i32 = arith.constant 0 : i32
    %c0_i32_0 = arith.constant 0 : i32
    %c0_i32_1 = arith.constant 0 : i32
    return %c0_i32, %c0_i32_0 : i32, i32
  }
  func.func @transform_3(%arg0: i32) -> (i32, i32) {
    %c0_i32 = arith.constant 0 : i32
    %c0_i32_0 = arith.constant 0 : i32
    %c0_i32_1 = arith.constant 0 : i32
    return %c0_i32, %c0_i32_0 : i32, i32
  }
  func.func @transform_4(%arg0: i32) -> (i32, i32) {
    %c0_i32 = arith.constant 0 : i32
    %c0_i32_0 = arith.constant 0 : i32
    %c0_i32_1 = arith.constant 0 : i32
    return %c0_i32, %c0_i32_0 : i32, i32
  }
  func.func @transform_5(%arg0: i32) -> (i32, i32) {
    %c0_i32 = arith.constant 0 : i32
    %c0_i32_0 = arith.constant 0 : i32
    %c0_i32_1 = arith.constant 0 : i32
    return %c0_i32, %c0_i32_0 : i32, i32
  }
  func.func @transform_6(%arg0: i32) -> (i32, i32) {
    %c0_i32 = arith.constant 0 : i32
    %c0_i32_0 = arith.constant 0 : i32
    %c0_i32_1 = arith.constant 0 : i32
    return %c0_i32, %c0_i32_0 : i32, i32
  }
  func.func @transform_7(%arg0: i32) -> (i32, i32) {
    %c0_i32 = arith.constant 0 : i32
    %c0_i32_0 = arith.constant 0 : i32
    %c0_i32_1 = arith.constant 0 : i32
    return %c0_i32, %c0_i32_0 : i32, i32
  }
  func.func @transform_8(%arg0: i32) -> (i32, i32) {
    %c0_i32 = arith.constant 0 : i32
    %c0_i32_0 = arith.constant 0 : i32
    %c0_i32_1 = arith.constant 0 : i32
    return %c0_i32, %c0_i32_0 : i32, i32
  }
  func.func @transform_9(%arg0: i32) -> (i32, i32) {
    %c0_i32 = arith.constant 0 : i32
    %c0_i32_0 = arith.constant 0 : i32
    %c0_i32_1 = arith.constant 0 : i32
    return %c0_i32, %c0_i32_0 : i32, i32
  }
  func.func @transform_10(%arg0: i32) -> (i32, i32) {
    %c0_i32 = arith.constant 0 : i32
    %c0_i32_0 = arith.constant 0 : i32
    %c0_i32_1 = arith.constant 0 : i32
    return %c0_i32, %c0_i32_0 : i32, i32
  }
  func.func @transform_11(%arg0: i32) -> (i32, i32) {
    %c0_i32 = arith.constant 0 : i32
    %c0_i32_0 = arith.constant 0 : i32
    %c0_i32_1 = arith.constant 0 : i32
    return %c0_i32, %c0_i32_0 : i32, i32
  }
  func.func @transform_12(%arg0: i32) -> (i32, i32) {
    %c0_i32 = arith.constant 0 : i32
    %c0_i32_0 = arith.constant 0 : i32
    %c0_i32_1 = arith.constant 0 : i32
    return %c0_i32, %c0_i32_0 : i32, i32
  }
  func.func @transform_13(%arg0: i32) -> (i32, i32) {
    %c0_i32 = arith.constant 0 : i32
    %c0_i32_0 = arith.constant 0 : i32
    %c0_i32_1 = arith.constant 0 : i32
    return %c0_i32, %c0_i32_0 : i32, i32
  }
  func.func @transform_14(%arg0: i32) -> (i32, i32) {
    %c0_i32 = arith.constant 0 : i32
    %c0_i32_0 = arith.constant 0 : i32
    return %arg0, %c0_i32 : i32, i32
  }
  func.func @transform_15(%arg0: i32) -> (i32, i32) {
    %c0_i32 = arith.constant 0 : i32
    %c0_i32_0 = arith.constant 0 : i32
    return %arg0, %c0_i32 : i32, i32
  }
}

</mosaic_0001>

<bundles_post_ra>
// kernel: _lambda_.1
= control target key start
LH: loop header
LB: loop body
LE: loop exit
PB: predicated region body
PF: predicated region fallthrough
CT: control target
= control target key end

     0   :  { %21 = vsyncpa [#allocation3], 0  ;;  %s1370_s0 = inlined_call_operand.vmem [shape: f32[8,256], index: 0, kind: input, shape index: {}]   ;;  %s1371_s1 = inlined_call_operand.vmem [shape: f32[8,128], index: 1, kind: input, shape index: {}]   ;;  %s1372_s2 = inlined_call_operand.hbm [shape: f32[256,128], index: 2, kind: input, shape index: {}]   ;;  %s1373_s3 = inlined_call_operand.vmem [shape: f32[1,128], index: 3, kind: input, shape index: {}]   ;;  %s1374_s4 = inlined_call_operand.hbm [shape: f32[128,128], index: 4, kind: input, shape index: {}]   ;;  %s1375_s5 = inlined_call_operand.vmem [shape: f32[1,128], index: 5, kind: input, shape index: {}]   ;;  %s1376_s6 = inlined_call_operand.hbm [shape: f32[128,128], index: 6, kind: input, shape index: {}]   ;;  %s1377_s7 = inlined_call_operand.vmem [shape: f32[1,128], index: 7, kind: input, shape index: {}]   ;;  %s1378_s8 = inlined_call_operand.hbm [shape: f32[128,128], index: 8, kind: input, shape index: {}]   ;;  %s1379_s9 = inlined_call_operand.vmem [shape: f32[1,128], index: 9, kind: input, shape index: {}]   ;;  %s1380_s10 = inlined_call_operand.hbm [shape: f32[128,256], index: 10, kind: input, shape index: {}]   ;;  %s1381_s11 = inlined_call_operand.vmem [shape: f32[1,256], index: 11, kind: input, shape index: {}]   ;;  %s1382_s12 = inlined_call_operand.hbm [shape: f32[256,256], index: 12, kind: input, shape index: {}]   ;;  %s1383_s13 = inlined_call_operand.vmem [shape: f32[1,256], index: 13, kind: input, shape index: {}]   ;;  %s1384_s14 = inlined_call_operand.vmem [shape: f32[8,128], index: 14, kind: output, shape index: {0}]   ;;  %s1385_s15 = inlined_call_operand.vmem [shape: f32[8,256], index: 15, kind: output, shape index: {1}]  }
   0x1   :  { %22 = vsyncpa [#allocation5], 0 }
   0x2   :  { %23 = vsyncpa [#allocation8], 0 }
   0x3   :  { %24 = vsyncpa [#allocation11], 0  ;;  %s1160_s17 = smov [#allocation4]   ;;  %s1161_s18 = smov [#allocation7]  }
   0x4   :  { %s48_s1 = sshll.u32 %s1160_s17, 4  ;;  %s76_s19 = sshll.u32 %s1161_s18, 4  ;;  %s49_s1 = int_to_ptr.vmem [resolvable:$true] %s48_s1  ;;  %s77_s19 = int_to_ptr.vmem [resolvable:$true] %s76_s19 }
   0x5   :  { %s1040_s20 = scalar_lea.vmem %s49_s1, 2048  ;;  %p1045_p1 = scmp.lt.s32.totalorder %s49_s1, %s49_s1 }
   0x6   :  { %p1041_p0 = scmp.ne.s32.totalorder %s49_s1, %s1040_s20  ;;  %p1046_p2 = scmp.lt.s32.totalorder %s1040_s20, %s1040_s20 }
   0x8   :  { %p1047_p3 = por %p1046_p2, %p1045_p1 }
   0xa   :  { %p1048_p4 = pnand %p1047_p3, %p1041_p0 }
   0xc   :  { %1051 = shalt.err (!%p1048_p4)
}
   0xd   :  { %s1162_s21 = smov 128   ;;  %s1163_s22 = smov 8  }
   0xe   :  { %54 = dma.hbm_to_vmem [thread:$0]  %s1374_s4, 2048, %s49_s1, [#allocation5], %s1162_s21, %s1162_s21, %s1163_s22  }
   0xf   :  { %s1060_s25 = scalar_lea.vmem %s77_s19, 2048  ;;  %p1065_p6 = scmp.lt.s32.totalorder %s77_s19, %s77_s19 }
  0x10   :  { %p1061_p5 = scmp.ne.s32.totalorder %s77_s19, %s1060_s25  ;;  %p1066_p7 = scmp.lt.s32.totalorder %s1060_s25, %s1060_s25 }
  0x12   :  { %p1067_p8 = por %p1066_p7, %p1065_p6 }
  0x14   :  { %p1068_p9 = pnand %p1067_p8, %p1061_p5 }
  0x16   :  { %1071 = shalt.err (!%p1068_p9)
}
  0x17   :  { %82 = dma.hbm_to_vmem [thread:$0]  %s1378_s8, 2048, %s77_s19, [#allocation8], %s1162_s21, %s1162_s21, %s1163_s22  }
  0x18   :  { %s1164_s28 = smov [#allocation2]   ;;  %s1165_s30 = smov [#allocation6]  }
  0x19   :  { %s34_s29 = sshll.u32 %s1164_s28, 4  ;;  %s62_s16 = sshll.u32 %s1165_s30, 4  ;;  %s35_s29 = int_to_ptr.vmem [resolvable:$true] %s34_s29  ;;  %s63_s16 = int_to_ptr.vmem [resolvable:$true] %s62_s16 }
  0x1a   :  { %s1080_s4 = scalar_lea.vmem %s35_s29, 4096  ;;  %p1085_p11 = scmp.lt.s32.totalorder %s35_s29, %s35_s29 }
  0x1b   :  { %p1081_p10 = scmp.ne.s32.totalorder %s35_s29, %s1080_s4  ;;  %p1086_p12 = scmp.lt.s32.totalorder %s1080_s4, %s1080_s4 }
  0x1d   :  { %p1087_p13 = por %p1086_p12, %p1085_p11 }
  0x1f   :  { %p1088_p0 = pnand %p1087_p13, %p1081_p10 }
  0x21   :  { %1091 = shalt.err (!%p1088_p0)
}
  0x22   :  { %40 = dma.hbm_to_vmem [thread:$0]  %s1372_s2, 4096, %s35_s29, [#allocation3], %s1162_s21, %s1162_s21, %s1163_s22  }
  0x23   :  { %s1100_s8 = scalar_lea.vmem %s63_s16, 2048  ;;  %p1105_p2 = scmp.lt.s32.totalorder %s63_s16, %s63_s16 }
  0x24   :  { %p1101_p1 = scmp.ne.s32.totalorder %s63_s16, %s1100_s8  ;;  %p1106_p3 = scmp.lt.s32.totalorder %s1100_s8, %s1100_s8 }
  0x26   :  { %p1107_p4 = por %p1106_p3, %p1105_p2 }
  0x28   :  { %p1108_p5 = pnand %p1107_p4, %p1101_p1 }
  0x2a   :  { %1111 = shalt.err (!%p1108_p5)
}
  0x2b   :  { %68 = dma.hbm_to_vmem [thread:$0]  %s1376_s6, 2048, %s63_s16, [#allocation5], %s1162_s21, %s1162_s21, %s1163_s22  }
  0x2c   :  { %s1166_s20 = smov [#allocation9]  }
  0x2d   :  { %s90_s23 = sshll.u32 %s1166_s20, 4  ;;  %s91_s23 = int_to_ptr.vmem [resolvable:$true] %s90_s23 }
  0x2e   :  { %s1120_s24 = scalar_lea.vmem %s91_s23, 4096  ;;  %p1125_p7 = scmp.lt.s32.totalorder %s91_s23, %s91_s23 }
  0x2f   :  { %p1121_p6 = scmp.ne.s32.totalorder %s91_s23, %s1120_s24  ;;  %p1126_p8 = scmp.lt.s32.totalorder %s1120_s24, %s1120_s24 }
  0x31   :  { %p1127_p9 = por %p1126_p8, %p1125_p7 }
  0x33   :  { %p1128_p10 = pnand %p1127_p9, %p1121_p6 }
  0x35   :  { %1131 = shalt.err (!%p1128_p10)
}
  0x36   :  { %s1167_s2 = smov 256   ;;  %s1168_s25 = smov 16  }
  0x37   :  { %96 = dma.hbm_to_vmem [thread:$0]  %s1380_s10, 4096, %s91_s23, [#allocation8], %s1167_s2, %s1167_s2, %s1168_s25  }
  0x38   :  { %s1169_s28 = smov [#allocation10]  }
  0x39   :  { %s104_s29 = sshll.u32 %s1169_s28, 4  ;;  %s105_s29 = int_to_ptr.vmem [resolvable:$true] %s104_s29 }
  0x3a   :  { %s1140_s6 = scalar_lea.vmem %s105_s29, 8192  ;;  %p1145_p12 = scmp.lt.s32.totalorder %s105_s29, %s105_s29 }
  0x3b   :  { %p1141_p11 = scmp.ne.s32.totalorder %s105_s29, %s1140_s6  ;;  %p1146_p13 = scmp.lt.s32.totalorder %s1140_s6, %s1140_s6 }
  0x3d   :  { %p1147_p0 = por %p1146_p13, %p1145_p12 }
  0x3f   :  { %p1148_p1 = pnand %p1147_p0, %p1141_p11 }
  0x41   :  { %1151 = shalt.err (!%p1148_p1)
}
  0x42   :  { %110 = dma.hbm_to_vmem [thread:$0]  %s1382_s12, 8192, %s105_s29, [#allocation11], %s1167_s2, %s1167_s2, %s1168_s25  }
  0x43   :  { %1152 = dma.done.wait [#allocation3], 4096  }
  0x44   :  { %1153 = vsyncadd [#allocation3], 4294963200 }
  0x45   :  { %1154 = dma.done.wait [#allocation5], 4096  }
  0x46   :  { %1155 = vsyncadd [#allocation5], 4294963200 }
  0x47   :  { %1156 = dma.done.wait [#allocation8], 6144  }
  0x48   :  { %1157 = vsyncadd [#allocation8], 4294961152 }
  0x49   :  { %1158 = dma.done.wait [#allocation11], 8192  }
  0x4a   :  { %1159 = vsyncadd [#allocation11], 4294959104  ;;  %v1170_v0 = vmov 0.0   ;;  %v164_v1 = vld [vmem:[#allocation2 + $0xf8] sm:$0xff]  ;;  %v163_v3 = vld [vmem:[#allocation2 + $0xf0] sm:$0xff]  ;;  %vm1171_vm0 = vmmov 0  }
  0x4b   :  { %907 = vmatprep.subr.mxu1 %v1170_v0  ;;  %v148_v2 = vld [vmem:[#allocation2 + $0x78] sm:$0xff]  ;;  %821 = vmatprep.subr.mxu0 %v164_v1  ;;  %v147_v4 = vld [vmem:[#allocation2 + $0x70] sm:$0xff]  ;;  %v162_v5 = vld [vmem:[#allocation2 + $0xe8] sm:$0xff] }
  0x4c   :  { %822 = vmatpush3.msra.mxu0 %v148_v2  ;;  %v146_v6 = vld [vmem:[#allocation2 + $0x68] sm:$0xff]  ;;  %v161_v7 = vld [vmem:[#allocation2 + $0xe0] sm:$0xff]  ;;  %v160_v9 = vld [vmem:[#allocation2 + $0xd8] sm:$0xff]  ;;  %939 = vmatprep.mubr.msk.f32.mxu1 %vm1171_vm0, %v1170_v0 }
  0x4d   :  { %823 = vmatprep.subr.mxu0 %v163_v3  ;;  %v145_v8 = vld [vmem:[#allocation2 + $0x60] sm:$0xff]  ;;  %v144_v10 = vld [vmem:[#allocation2 + $0x58] sm:$0xff]  ;;  %v159_v11 = vld [vmem:[#allocation2 + $0xd0] sm:$0xff] }
  0x4e   :  { %824 = vmatpush3.msra.mxu0 %v147_v4  ;;  %v143_v12 = vld [vmem:[#allocation2 + $0x50] sm:$0xff]  ;;  %v158_v13 = vld [vmem:[#allocation2 + $0xc8] sm:$0xff]  ;;  %v258_v16 = vld [vmem:[#allocation4 + $0x78] sm:$0xff] }
  0x4f   :  { %825 = vmatprep.subr.mxu0 %v162_v5  ;;  %v132_v14 = vld [vmem:[%s1370_s0 + $0x8] sm:$0xff]  ;;  %v257_v17 = vld [vmem:[#allocation4 + $0x70] sm:$0xff]  ;;  %v157_v18 = vld [vmem:[#allocation2 + $0xc0] sm:$0xff]  ;;  %908 = vmatpush3.msra.mxu1 %v258_v16 }
  0x50   :  { %826 = vmatpush3.msra.mxu0 %v146_v6  ;;  %v142_v15 = vld [vmem:[#allocation2 + $0x48] sm:$0xff]  ;;  %236 = vmatprep.mubr.f32.mxu0 %v132_v14  ;;  %v141_v19 = vld [vmem:[#allocation2 + $0x40] sm:$0xff]  ;;  %v156_v21 = vld [vmem:[#allocation2 + $0xb8] sm:$0xff] }
  0x51   :  { %827 = vmatprep.subr.mxu0 %v161_v7  ;;  %909 = vmatprep.subr.mxu1 %v1170_v0  ;;  %v256_v20 = vld [vmem:[#allocation4 + $0x68] sm:$0xff]  ;;  %v140_v22 = vld [vmem:[#allocation2 + $0x38] sm:$0xff]  ;;  %v255_v23 = vld [vmem:[#allocation4 + $0x60] sm:$0xff] }
  0x52   :  { %828 = vmatpush3.msra.mxu0 %v145_v8  ;;  %910 = vmatpush3.msra.mxu1 %v257_v17  ;;  %v155_v24 = vld [vmem:[#allocation2 + $0xb0] sm:$0xff]  ;;  %v254_v26 = vld [vmem:[#allocation4 + $0x58] sm:$0xff]  ;;  %v154_v27 = vld [vmem:[#allocation2 + $0xa8] sm:$0xff] }
  0x53   :  { %829 = vmatprep.subr.mxu0 %v160_v9  ;;  %911 = vmatprep.subr.mxu1 %v1170_v0  ;;  %v139_v25 = vld [vmem:[#allocation2 + $0x30] sm:$0xff]  ;;  %v138_v28 = vld [vmem:[#allocation2 + $0x28] sm:$0xff]  ;;  %v153_v30 = vld [vmem:[#allocation2 + $0xa0] sm:$0xff] }
  0x54   :  { %830 = vmatpush3.msra.mxu0 %v144_v10  ;;  %912 = vmatpush3.msra.mxu1 %v256_v20  ;;  %v253_v29 = vld [vmem:[#allocation4 + $0x50] sm:$0xff]  ;;  %v137_v31 = vld [vmem:[#allocation2 + $0x20] sm:$0xff]  ;;  %v252_v32 = vld [vmem:[#allocation4 + $0x48] sm:$0xff] }
  0x55   :  { %831 = vmatprep.subr.mxu0 %v159_v11  ;;  %913 = vmatprep.subr.mxu1 %v1170_v0  ;;  %v152_v33 = vld [vmem:[#allocation2 + $0x98] sm:$0xff]  ;;  %v251_v35 = vld [vmem:[#allocation4 + $0x40] sm:$0xff]  ;;  %v151_v36 = vld [vmem:[#allocation2 + $0x90] sm:$0xff] }
  0x56   :  { %832 = vmatpush3.msra.mxu0 %v143_v12  ;;  %914 = vmatpush3.msra.mxu1 %v255_v23  ;;  %v136_v34 = vld [vmem:[#allocation2 + $0x18] sm:$0xff]  ;;  %v135_v37 = vld [vmem:[#allocation2 + $0x10] sm:$0xff]  ;;  %v150_v39 = vld [vmem:[#allocation2 + $0x88] sm:$0xff] }
  0x57   :  { %833 = vmatprep.subr.mxu0 %v158_v13  ;;  %915 = vmatprep.subr.mxu1 %v1170_v0  ;;  %v250_v38 = vld [vmem:[#allocation4 + $0x38] sm:$0xff]  ;;  %v134_v40 = vld [vmem:[#allocation2 + $0x8] sm:$0xff]  ;;  %v249_v41 = vld [vmem:[#allocation4 + $0x30] sm:$0xff] }
  0x58   :  { %834 = vmatpush3.msra.mxu0 %v142_v15  ;;  %916 = vmatpush3.msra.mxu1 %v254_v26  ;;  %v149_v42 = vld [vmem:[#allocation2 + $0x80] sm:$0xff]  ;;  %v248_v44 = vld [vmem:[#allocation4 + $0x28] sm:$0xff]  ;;  %v246_v47 = vld [vmem:[#allocation4 + $0x18] sm:$0xff] }
  0x59   :  { %835 = vmatprep.subr.mxu0 %v157_v18  ;;  %917 = vmatprep.subr.mxu1 %v1170_v0  ;;  %v133_v43 = vld [vmem:[#allocation2] sm:$0xff]  ;;  %v245_v48 = vld [vmem:[#allocation4 + $0x10] sm:$0xff]  ;;  %v244_v49 = vld [vmem:[#allocation4 + $0x8] sm:$0xff] }
  0x5a   :  { %836 = vmatpush3.msra.mxu0 %v141_v19  ;;  %918 = vmatpush3.msra.mxu1 %v253_v29  ;;  %v131_v45 = vld [vmem:[%s1370_s0] sm:$0xff]  ;;  %v352_v51 = vld [vmem:[#allocation6 + $0x78] sm:$0xff]  ;;  %v351_v52 = vld [vmem:[#allocation6 + $0x70] sm:$0xff] }
  0x5b   :  { %837 = vmatprep.subr.mxu0 %v156_v21  ;;  %919 = vmatprep.subr.mxu1 %v1170_v0  ;;  %v247_v46 = vld [vmem:[#allocation4 + $0x20] sm:$0xff]  ;;  %v350_v53 = vld [vmem:[#allocation6 + $0x68] sm:$0xff]  ;;  %v348_v55 = vld [vmem:[#allocation6 + $0x58] sm:$0xff] }
  0x5c   :  { %838 = vmatpush3.msra.mxu0 %v140_v22  ;;  %920 = vmatpush3.msra.mxu1 %v252_v32  ;;  %v243_v50 = vld [vmem:[#allocation4] sm:$0xff]  ;;  %v347_v56 = vld [vmem:[#allocation6 + $0x50] sm:$0xff]  ;;  %v346_v57 = vld [vmem:[#allocation6 + $0x48] sm:$0xff] }
  0x5d   :  { %839 = vmatprep.subr.mxu0 %v155_v24  ;;  %921 = vmatprep.subr.mxu1 %v1170_v0  ;;  %v349_v54 = vld [vmem:[#allocation6 + $0x60] sm:$0xff]  ;;  %v344_v59 = vld [vmem:[#allocation6 + $0x38] sm:$0xff]  ;;  %v343_v60 = vld [vmem:[#allocation6 + $0x30] sm:$0xff] }
  0x5e   :  { %840 = vmatpush3.msra.mxu0 %v139_v25  ;;  %922 = vmatpush3.msra.mxu1 %v251_v35  ;;  %v345_v58 = vld [vmem:[#allocation6 + $0x40] sm:$0xff]  ;;  %v342_v61 = vld [vmem:[#allocation6 + $0x28] sm:$0xff]  ;;  %v340_v63 = vld [vmem:[#allocation6 + $0x18] sm:$0xff] }
  0x5f   :  { %841 = vmatprep.subr.mxu0 %v154_v27  ;;  %923 = vmatprep.subr.mxu1 %v1170_v0  ;;  %v341_v62 = vld [vmem:[#allocation6 + $0x20] sm:$0xff]  ;;  %v339_v1 = vld [vmem:[#allocation6 + $0x10] sm:$0xff]  ;;  %v338_v8 = vld [vmem:[#allocation6 + $0x8] sm:$0xff] }
  0x60   :  { %842 = vmatpush3.msra.mxu0 %v138_v28  ;;  %924 = vmatpush3.msra.mxu1 %v250_v38  ;;  %v817_v3 = vld [vmem:[%s1373_s3] ss:$0 sm:$0xff]  ;;  %v446_v10 = vld [vmem:[#allocation7 + $0x78] sm:$0xff]  ;;  %v445_v11 = vld [vmem:[#allocation7 + $0x70] sm:$0xff] }
  0x61   :  { %843 = vmatprep.subr.mxu0 %v153_v30  ;;  %925 = vmatprep.subr.mxu1 %v1170_v0  ;;  %v337_v9 = vld [vmem:[#allocation6] sm:$0xff]  ;;  %v444_v12 = vld [vmem:[#allocation7 + $0x68] sm:$0xff]  ;;  %v442_v14 = vld [vmem:[#allocation7 + $0x58] sm:$0xff] }
  0x62   :  { %844 = vmatpush3.msra.mxu0 %v137_v31  ;;  %926 = vmatpush3.msra.mxu1 %v249_v41  ;;  %v443_v13 = vld [vmem:[#allocation7 + $0x60] sm:$0xff]  ;;  %v441_v15 = vld [vmem:[#allocation7 + $0x50] sm:$0xff]  ;;  %v440_v16 = vld [vmem:[#allocation7 + $0x48] sm:$0xff] }
  0x63   :  { %845 = vmatprep.subr.mxu0 %v152_v33  ;;  %927 = vmatprep.subr.mxu1 %v1170_v0  ;;  %v439_v17 = vld [vmem:[#allocation7 + $0x40] sm:$0xff]  ;;  %v438_v18 = vld [vmem:[#allocation7 + $0x38] sm:$0xff]  ;;  %v437_v19 = vld [vmem:[#allocation7 + $0x30] sm:$0xff] }
  0x64   :  { %846 = vmatpush3.msra.mxu0 %v136_v34  ;;  %928 = vmatpush3.msra.mxu1 %v248_v44  ;;  %v436_v20 = vld [vmem:[#allocation7 + $0x28] sm:$0xff]  ;;  %v435_v21 = vld [vmem:[#allocation7 + $0x20] sm:$0xff]  ;;  %v434_v22 = vld [vmem:[#allocation7 + $0x18] sm:$0xff] }
  0x65   :  { %847 = vmatprep.subr.mxu0 %v151_v36  ;;  %929 = vmatprep.subr.mxu1 %v1170_v0  ;;  %v818_v23 = vld [vmem:[%s1375_s5] ss:$0 sm:$0xff]  ;;  %v433_v27 = vld [vmem:[#allocation7 + $0x10] sm:$0xff]  ;;  %v432_v28 = vld [vmem:[#allocation7 + $0x8] sm:$0xff] }
  0x66   :  { %848 = vmatpush3.msra.mxu0 %v135_v37  ;;  %930 = vmatpush3.msra.mxu1 %v247_v46  ;;  %v431_v29 = vld [vmem:[#allocation7] sm:$0xff]  ;;  %v556_v30 = vld [vmem:[#allocation9 + $0xf8] sm:$0xff]  ;;  %v555_v31 = vld [vmem:[#allocation9 + $0xf0] sm:$0xff] }
  0x67   :  { %849 = vmatprep.subr.mxu0 %v150_v39  ;;  %931 = vmatprep.subr.mxu1 %v1170_v0  ;;  %v554_v32 = vld [vmem:[#allocation9 + $0xe8] sm:$0xff]  ;;  %v553_v33 = vld [vmem:[#allocation9 + $0xe0] sm:$0xff]  ;;  %v552_v34 = vld [vmem:[#allocation9 + $0xd8] sm:$0xff] }
  0x68   :  { %850 = vmatpush3.msra.mxu0 %v134_v40  ;;  %932 = vmatpush3.msra.mxu1 %v246_v47  ;;  %v551_v35 = vld [vmem:[#allocation9 + $0xd0] sm:$0xff]  ;;  %v550_v36 = vld [vmem:[#allocation9 + $0xc8] sm:$0xff]  ;;  %v549_v37 = vld [vmem:[#allocation9 + $0xc0] sm:$0xff] }
  0x69   :  { %851 = vmatprep.subr.mxu0 %v149_v42  ;;  %933 = vmatprep.subr.mxu1 %v1170_v0  ;;  %v548_v38 = vld [vmem:[#allocation9 + $0xb8] sm:$0xff]  ;;  %v547_v39 = vld [vmem:[#allocation9 + $0xb0] sm:$0xff]  ;;  %v545_v40 = vld [vmem:[#allocation9 + $0xa0] sm:$0xff] }
  0x6a   :  { %852 = vmatpush3.msra.mxu0 %v133_v43  ;;  %934 = vmatpush3.msra.mxu1 %v245_v48  ;;  %v544_v41 = vld [vmem:[#allocation9 + $0x98] sm:$0xff]  ;;  %v543_v42 = vld [vmem:[#allocation9 + $0x90] sm:$0xff]  ;;  %v542_v43 = vld [vmem:[#allocation9 + $0x88] sm:$0xff] }
  0x6b   :  { %237 = vmatmul.mubr.f32.vlgmr.msra.gmra.mxu0 %v131_v45  ;;  %942 = vmatprep.subr.mxu0 %v1170_v0  ;;  %v541_v44 = vld [vmem:[#allocation9 + $0x80] sm:$0xff]  ;;  %v540_v45 = vld [vmem:[#allocation9 + $0x78] sm:$0xff]  ;;  %v539_v46 = vld [vmem:[#allocation9 + $0x70] sm:$0xff] }
  0x6c   :  { %935 = vmatprep.subr.mxu1 %v1170_v0  ;;  %974 = vmatprep.mubr.msk.f32.mxu0 %vm1171_vm0, %v1170_v0  ;;  %v538_v47 = vld [vmem:[#allocation9 + $0x68] sm:$0xff]  ;;  %v537_v48 = vld [vmem:[#allocation9 + $0x60] sm:$0xff] }
  0x6d   :  { %936 = vmatpush3.msra.mxu1 %v244_v49  ;;  %943 = vmatpush3.msra.mxu0 %v352_v51  ;;  %v536_v49 = vld [vmem:[#allocation9 + $0x58] sm:$0xff]  ;;  %v534_v51 = vld [vmem:[#allocation9 + $0x48] sm:$0xff] }
  0x6e   :  { %937 = vmatprep.subr.mxu1 %v1170_v0  ;;  %944 = vmatprep.subr.mxu0 %v1170_v0 }
  0x6f   :  { %938 = vmatpush3.msra.mxu1 %v243_v50  ;;  %945 = vmatpush3.msra.mxu0 %v351_v52  ;;  %v535_v50 = vld [vmem:[#allocation9 + $0x50] sm:$0xff]  ;;  %v533_v52 = vld [vmem:[#allocation9 + $0x40] sm:$0xff] }
  0x70   :  { %977 = vmatprep.subr.mxu1 %v1170_v0  ;;  %946 = vmatprep.subr.mxu0 %v1170_v0 }
  0x71   :  { %947 = vmatpush3.msra.mxu0 %v350_v53  ;;  %v532_v53 = vld [vmem:[#allocation9 + $0x38] sm:$0xff] }
  0x72   :  { %948 = vmatprep.subr.mxu0 %v1170_v0 }
  0x73   :  { %949 = vmatpush3.msra.mxu0 %v349_v54  ;;  %v531_v54 = vld [vmem:[#allocation9 + $0x30] sm:$0xff] }
  0x74   :  { %950 = vmatprep.subr.mxu0 %v1170_v0 }
  0x75   :  { %951 = vmatpush3.msra.mxu0 %v348_v55  ;;  %v530_v55 = vld [vmem:[#allocation9 + $0x28] sm:$0xff] }
  0x76   :  { %952 = vmatprep.subr.mxu0 %v1170_v0 }
  0x77   :  { %953 = vmatpush3.msra.mxu0 %v347_v56  ;;  %v819_v56 = vld [vmem:[%s1377_s7] ss:$0 sm:$0xff] }
  0x78   :  { %954 = vmatprep.subr.mxu0 %v1170_v0 }
  0x79   :  { %955 = vmatpush3.msra.mxu0 %v346_v57 }
  0x7a   :  { %956 = vmatprep.subr.mxu0 %v1170_v0 }
  0x7b   :  { %957 = vmatpush3.msra.mxu0 %v345_v58 }
  0x7c   :  { %958 = vmatprep.subr.mxu0 %v1170_v0 }
  0x7d   :  { %959 = vmatpush3.msra.mxu0 %v344_v59 }
  0x7e   :  { %960 = vmatprep.subr.mxu0 %v1170_v0 }
  0x7f   :  { %961 = vmatpush3.msra.mxu0 %v343_v60 }
  0x80   :  { %962 = vmatprep.subr.mxu0 %v1170_v0 }
  0x81   :  { %963 = vmatpush3.msra.mxu0 %v342_v61  ;;  %v529_v61 = vld [vmem:[#allocation9 + $0x20] sm:$0xff] }
  0x82   :  { %964 = vmatprep.subr.mxu0 %v1170_v0 }
  0x83   :  { %965 = vmatpush3.msra.mxu0 %v341_v62  ;;  %v528_v62 = vld [vmem:[#allocation9 + $0x18] sm:$0xff] }
  0x84   :  { %966 = vmatprep.subr.mxu0 %v1170_v0 }
  0x85   :  { %967 = vmatpush3.msra.mxu0 %v340_v63  ;;  %v527_v63 = vld [vmem:[#allocation9 + $0x10] sm:$0xff] }
  0x86   :  { %968 = vmatprep.subr.mxu0 %v1170_v0 }
  0x87   :  { %969 = vmatpush3.msra.mxu0 %v339_v1  ;;  %v526_v1 = vld [vmem:[#allocation9 + $0x8] sm:$0xff] }
  0x88   :  { %970 = vmatprep.subr.mxu0 %v1170_v0 }
  0x89   :  { %971 = vmatpush3.msra.mxu0 %v338_v8  ;;  %v668_v8 = vld [vmem:[#allocation10 + $0xd0] sm:$0xff] }
  0x8a   :  { %972 = vmatprep.subr.mxu0 %v1170_v0 }
  0x8b   :  { %973 = vmatpush3.msra.mxu0 %v337_v9  ;;  %v667_v9 = vld [vmem:[#allocation10 + $0xc8] sm:$0xff] }
  0x8c   :  { %569 = vmatprep.subr.mxu0 %v556_v30  ;;  %v646_v30 = vld [vmem:[#allocation10 + $0x20] sm:$0xff] }
 0x12b   :  { %v853_v2 = vpop.f32.mrf.mxu0 }
 0x12d   :  { %v854_v4 = vpop.f32.mrf.mxu0 }
 0x12e   :  { %v855_v5 = vadd.f32 %v854_v4, %v853_v2  ;;  %v525_v2 = vld [vmem:[#allocation9] sm:$0xff]  ;;  %v672_v4 = vld [vmem:[#allocation10 + $0xf0] sm:$0xff] }
 0x130   :  { %v239_v6 = vadd.f32 %v855_v5, %v817_v3  ;;  %v673_v3 = vld [vmem:[#allocation10 + $0xf8] sm:$0xff]  ;;  %v671_v5 = vld [vmem:[#allocation10 + $0xe8] sm:$0xff] }
 0x132   :  { %v242_v7 = vmax.f32 %v239_v6, 0.0  ;;  %v670_v6 = vld [vmem:[#allocation10 + $0xe0] sm:$0xff] }
 0x134   :  { %940 = vmatmul.mubr.f32.vlgmr.msra.gmra.mxu1 %v242_v7  ;;  %v669_v7 = vld [vmem:[#allocation10 + $0xd8] sm:$0xff] }
 0x135   :  { %1009 = vmatprep.mubr.msk.f32.mxu1 %vm1171_vm0, %v1170_v0  ;;  %978 = vmatpush3.msra.mxu1 %v446_v10  ;;  %v666_v10 = vld [vmem:[#allocation10 + $0xc0] sm:$0xff] }
 0x136   :  { %979 = vmatprep.subr.mxu1 %v1170_v0 }
 0x137   :  { %980 = vmatpush3.msra.mxu1 %v445_v11  ;;  %v665_v11 = vld [vmem:[#allocation10 + $0xb8] sm:$0xff] }
 0x138   :  { %981 = vmatprep.subr.mxu1 %v1170_v0 }
 0x139   :  { %982 = vmatpush3.msra.mxu1 %v444_v12  ;;  %v664_v12 = vld [vmem:[#allocation10 + $0xb0] sm:$0xff] }
 0x13a   :  { %983 = vmatprep.subr.mxu1 %v1170_v0 }
 0x13b   :  { %984 = vmatpush3.msra.mxu1 %v443_v13  ;;  %v663_v13 = vld [vmem:[#allocation10 + $0xa8] sm:$0xff] }
 0x13c   :  { %985 = vmatprep.subr.mxu1 %v1170_v0 }
 0x13d   :  { %986 = vmatpush3.msra.mxu1 %v442_v14  ;;  %v662_v14 = vld [vmem:[#allocation10 + $0xa0] sm:$0xff] }
 0x13e   :  { %987 = vmatprep.subr.mxu1 %v1170_v0 }
 0x13f   :  { %988 = vmatpush3.msra.mxu1 %v441_v15  ;;  %v661_v15 = vld [vmem:[#allocation10 + $0x98] sm:$0xff] }
 0x140   :  { %989 = vmatprep.subr.mxu1 %v1170_v0 }
 0x141   :  { %990 = vmatpush3.msra.mxu1 %v440_v16  ;;  %v660_v16 = vld [vmem:[#allocation10 + $0x90] sm:$0xff] }
 0x142   :  { %991 = vmatprep.subr.mxu1 %v1170_v0 }
 0x143   :  { %992 = vmatpush3.msra.mxu1 %v439_v17  ;;  %v659_v17 = vld [vmem:[#allocation10 + $0x88] sm:$0xff] }
 0x144   :  { %993 = vmatprep.subr.mxu1 %v1170_v0 }
 0x145   :  { %994 = vmatpush3.msra.mxu1 %v438_v18  ;;  %v658_v18 = vld [vmem:[#allocation10 + $0x80] sm:$0xff] }
 0x146   :  { %995 = vmatprep.subr.mxu1 %v1170_v0 }
 0x147   :  { %996 = vmatpush3.msra.mxu1 %v437_v19  ;;  %v657_v19 = vld [vmem:[#allocation10 + $0x78] sm:$0xff] }
 0x148   :  { %997 = vmatprep.subr.mxu1 %v1170_v0 }
 0x149   :  { %998 = vmatpush3.msra.mxu1 %v436_v20  ;;  %v656_v20 = vld [vmem:[#allocation10 + $0x70] sm:$0xff] }
 0x14a   :  { %999 = vmatprep.subr.mxu1 %v1170_v0 }
 0x14b   :  { %1000 = vmatpush3.msra.mxu1 %v435_v21  ;;  %v655_v21 = vld [vmem:[#allocation10 + $0x68] sm:$0xff] }
 0x14c   :  { %1001 = vmatprep.subr.mxu1 %v1170_v0 }
 0x14d   :  { %1002 = vmatpush3.msra.mxu1 %v434_v22  ;;  %v654_v22 = vld [vmem:[#allocation10 + $0x60] sm:$0xff] }
 0x14e   :  { %1003 = vmatprep.subr.mxu1 %v1170_v0 }
 0x14f   :  { %1004 = vmatpush3.msra.mxu1 %v433_v27  ;;  %v649_v27 = vld [vmem:[#allocation10 + $0x38] sm:$0xff] }
 0x150   :  { %1005 = vmatprep.subr.mxu1 %v1170_v0 }
 0x151   :  { %1006 = vmatpush3.msra.mxu1 %v432_v28  ;;  %v648_v28 = vld [vmem:[#allocation10 + $0x30] sm:$0xff] }
 0x152   :  { %1007 = vmatprep.subr.mxu1 %v1170_v0 }
 0x153   :  { %1008 = vmatpush3.msra.mxu1 %v431_v29  ;;  %v647_v29 = vld [vmem:[#allocation10 + $0x28] sm:$0xff] }
 0x154   :  { %718 = vmatprep.subr.mxu1 %v673_v3  ;;  %v678_v3 = vld [vmem:[#allocation10 + $0x120] sm:$0xff] }
 0x1f4   :  { %v332_v24 = vpop.f32.mrf.mxu1 }
 0x1f5   :  { %v333_v25 = vadd.f32 %v818_v23, %v332_v24  ;;  %v653_v23 = vld [vmem:[#allocation10 + $0x58] sm:$0xff]  ;;  %v652_v24 = vld [vmem:[#allocation10 + $0x50] sm:$0xff] }
 0x1f6   :  { %v941_v26 = vpop.f32.mrf.mxu1 }
 0x1f7   :  { %336 = vst [vmem:[%s1384_s14] sm:$0xff] %v333_v25  ;;  %975 = vmatmul.mubr.f32.vlgmr.msra.gmra.mxu0 %v333_v25  ;;  %v651_v25 = vld [vmem:[#allocation10 + $0x48] sm:$0xff]  ;;  %v650_v26 = vld [vmem:[#allocation10 + $0x40] sm:$0xff] }
 0x1f8   :  { %633 = vmatprep.mubr.f32.mxu0 %v1170_v0  ;;  %570 = vmatpush1.msra.mxu0 %v555_v31  ;;  %v546_v0 = vld [vmem:[#allocation9 + $0xa8] sm:$0xff]  ;;  %v645_v31 = vld [vmem:[#allocation10 + $0x18] sm:$0xff] }
 0x1f9   :  { %571 = vmatprep.subr.mxu0 %v554_v32  ;;  %v644_v32 = vld [vmem:[#allocation10 + $0x10] sm:$0xff] }
 0x1fa   :  { %572 = vmatpush1.msra.mxu0 %v553_v33  ;;  %v643_v33 = vld [vmem:[#allocation10 + $0x8] sm:$0xff] }
 0x1fb   :  { %573 = vmatprep.subr.mxu0 %v552_v34  ;;  %v642_v34 = vld [vmem:[#allocation10] sm:$0xff] }
 0x1fc   :  { %574 = vmatpush1.msra.mxu0 %v551_v35  ;;  %v705_v35 = vld [vmem:[#allocation10 + $0x1f8] sm:$0xff] }
 0x1fd   :  { %575 = vmatprep.subr.mxu0 %v550_v36  ;;  %v704_v36 = vld [vmem:[#allocation10 + $0x1f0] sm:$0xff] }
 0x1fe   :  { %576 = vmatpush1.msra.mxu0 %v549_v37  ;;  %v703_v37 = vld [vmem:[#allocation10 + $0x1e8] sm:$0xff] }
 0x1ff   :  { %577 = vmatprep.subr.mxu0 %v548_v38  ;;  %v702_v38 = vld [vmem:[#allocation10 + $0x1e0] sm:$0xff] }
 0x200   :  { %578 = vmatpush1.msra.mxu0 %v547_v39  ;;  %v701_v39 = vld [vmem:[#allocation10 + $0x1d8] sm:$0xff] }
 0x201   :  { %579 = vmatprep.subr.mxu0 %v546_v0  ;;  %v700_v0 = vld [vmem:[#allocation10 + $0x1d0] sm:$0xff] }
 0x202   :  { %580 = vmatpush1.msra.mxu0 %v545_v40  ;;  %v699_v40 = vld [vmem:[#allocation10 + $0x1c8] sm:$0xff] }
 0x203   :  { %581 = vmatprep.subr.mxu0 %v544_v41  ;;  %v698_v41 = vld [vmem:[#allocation10 + $0x1c0] sm:$0xff] }
 0x204   :  { %582 = vmatpush1.msra.mxu0 %v543_v42  ;;  %v697_v42 = vld [vmem:[#allocation10 + $0x1b8] sm:$0xff] }
 0x205   :  { %583 = vmatprep.subr.mxu0 %v542_v43  ;;  %v696_v43 = vld [vmem:[#allocation10 + $0x1b0] sm:$0xff] }
 0x206   :  { %584 = vmatpush1.msra.mxu0 %v541_v44  ;;  %v695_v44 = vld [vmem:[#allocation10 + $0x1a8] sm:$0xff] }
 0x207   :  { %585 = vmatprep.subr.mxu0 %v540_v45  ;;  %v694_v45 = vld [vmem:[#allocation10 + $0x1a0] sm:$0xff] }
 0x208   :  { %586 = vmatpush1.msra.mxu0 %v539_v46  ;;  %v693_v46 = vld [vmem:[#allocation10 + $0x198] sm:$0xff] }
 0x209   :  { %587 = vmatprep.subr.mxu0 %v538_v47  ;;  %v692_v47 = vld [vmem:[#allocation10 + $0x190] sm:$0xff] }
 0x20a   :  { %588 = vmatpush1.msra.mxu0 %v537_v48  ;;  %v691_v48 = vld [vmem:[#allocation10 + $0x188] sm:$0xff] }
 0x20b   :  { %589 = vmatprep.subr.mxu0 %v536_v49  ;;  %v690_v49 = vld [vmem:[#allocation10 + $0x180] sm:$0xff] }
 0x20c   :  { %590 = vmatpush1.msra.mxu0 %v535_v50  ;;  %v689_v50 = vld [vmem:[#allocation10 + $0x178] sm:$0xff] }
 0x20d   :  { %591 = vmatprep.subr.mxu0 %v534_v51  ;;  %v688_v51 = vld [vmem:[#allocation10 + $0x170] sm:$0xff] }
 0x20e   :  { %592 = vmatpush1.msra.mxu0 %v533_v52  ;;  %v687_v52 = vld [vmem:[#allocation10 + $0x168] sm:$0xff] }
 0x20f   :  { %593 = vmatprep.subr.mxu0 %v532_v53  ;;  %v686_v53 = vld [vmem:[#allocation10 + $0x160] sm:$0xff] }
 0x210   :  { %594 = vmatpush1.msra.mxu0 %v531_v54  ;;  %v685_v54 = vld [vmem:[#allocation10 + $0x158] sm:$0xff] }
 0x211   :  { %595 = vmatprep.subr.mxu0 %v530_v55  ;;  %v684_v55 = vld [vmem:[#allocation10 + $0x150] sm:$0xff] }
 0x212   :  { %596 = vmatpush1.msra.mxu0 %v529_v61 }
 0x213   :  { %597 = vmatprep.subr.mxu0 %v528_v62 }
 0x214   :  { %598 = vmatpush1.msra.mxu0 %v527_v63  ;;  %v681_v63 = vld [vmem:[#allocation10 + $0x138] sm:$0xff] }
 0x215   :  { %599 = vmatprep.subr.mxu0 %v526_v1  ;;  %v680_v1 = vld [vmem:[#allocation10 + $0x130] sm:$0xff] }
 0x216   :  { %600 = vmatpush1.msra.mxu0 %v525_v2  ;;  %v679_v2 = vld [vmem:[#allocation10 + $0x128] sm:$0xff] }
 0x2b7   :  { %v426_v57 = vpop.f32.mrf.mxu0 }
 0x2b8   :  { %v427_v58 = vadd.f32 %v819_v56, %v426_v57  ;;  %v683_v56 = vld [vmem:[#allocation10 + $0x148] sm:$0xff]  ;;  %v682_v57 = vld [vmem:[#allocation10 + $0x140] sm:$0xff] }
 0x2b9   :  { %v976_v59 = vpop.f32.mrf.mxu0 }
 0x2ba   :  { %v430_v60 = vmax.f32 %v427_v58, 0.0  ;;  %v820_v58 = vld [vmem:[%s1379_s9] ss:$0 sm:$0xff] }
 0x2bc   :  { %1010 = vmatmul.mubr.f32.vlgmr.msra.gmra.mxu1 %v430_v60 }
 0x2bd   :  { %719 = vmatpush1.msra.mxu1 %v672_v4  ;;  %v677_v4 = vld [vmem:[#allocation10 + $0x118] sm:$0xff] }
 0x2be   :  { %720 = vmatprep.subr.mxu1 %v671_v5  ;;  %v676_v5 = vld [vmem:[#allocation10 + $0x110] sm:$0xff] }
 0x2bf   :  { %721 = vmatpush1.msra.mxu1 %v670_v6  ;;  %v675_v6 = vld [vmem:[#allocation10 + $0x108] sm:$0xff] }
 0x2c0   :  { %722 = vmatprep.subr.mxu1 %v669_v7  ;;  %v674_v7 = vld [vmem:[#allocation10 + $0x100] sm:$0xff] }
 0x2c1   :  { %723 = vmatpush1.msra.mxu1 %v668_v8  ;;  %v559_v8 = vlaneseq }
 0x2c2   :  { %724 = vmatprep.subr.mxu1 %v667_v9 }
 0x2c3   :  { %725 = vmatpush1.msra.mxu1 %v666_v10  ;;  %v560_v9 = vshrl.u32 %v559_v8, 7 }
 0x2c4   :  { %726 = vmatprep.subr.mxu1 %v665_v11  ;;  %v557_v11 = vld [vmem:[%s1381_s11] sm:$0x3] }
 0x2c5   :  { %727 = vmatpush1.msra.mxu1 %v664_v12  ;;  %v561_v10 = vsub.s32 0, %v560_v9  ;;  %v565_v12 = vsub.s32 1, %v560_v9 }
 0x2c6   :  { %728 = vmatprep.subr.mxu1 %v663_v13 }
 0x2c7   :  { %729 = vmatpush1.msra.mxu1 %v662_v14  ;;  %v562_v13 = vrot.slane %v557_v11, %v561_v10  ;;  %v566_v14 = vrot.slane %v557_v11, %v565_v12 }
 0x2c8   :  { %730 = vmatprep.subr.mxu1 %v661_v15 }
 0x2c9   :  { %731 = vmatpush1.msra.mxu1 %v660_v16 }
 0x2ca   :  { %732 = vmatprep.subr.mxu1 %v659_v17 }
 0x2cb   :  { %733 = vmatpush1.msra.mxu1 %v658_v18 }
 0x2cc   :  { %734 = vmatprep.subr.mxu1 %v657_v19 }
 0x2cd   :  { %735 = vmatpush1.msra.mxu1 %v656_v20 }
 0x2ce   :  { %736 = vmatprep.subr.mxu1 %v655_v21  ;;  %v706_v21 = vld [vmem:[%s1383_s13] sm:$0x3] }
 0x2cf   :  { %737 = vmatpush1.msra.mxu1 %v654_v22  ;;  %v711_v22 = vrot.slane %v706_v21, %v561_v10 }
 0x2d0   :  { %738 = vmatprep.subr.mxu1 %v653_v23  ;;  %v715_v23 = vrot.slane %v706_v21, %v565_v12 }
 0x2d1   :  { %739 = vmatpush1.msra.mxu1 %v652_v24 }
 0x2d2   :  { %740 = vmatprep.subr.mxu1 %v651_v25 }
 0x2d3   :  { %741 = vmatpush1.msra.mxu1 %v650_v26 }
 0x2d4   :  { %742 = vmatprep.subr.mxu1 %v649_v27 }
 0x2d5   :  { %743 = vmatpush1.msra.mxu1 %v648_v28 }
 0x2d6   :  { %744 = vmatprep.subr.mxu1 %v647_v29 }
 0x2d7   :  { %745 = vmatpush1.msra.mxu1 %v646_v30 }
 0x2d8   :  { %746 = vmatprep.subr.mxu1 %v645_v31 }
 0x2d9   :  { %747 = vmatpush1.msra.mxu1 %v644_v32 }
 0x2da   :  { %748 = vmatprep.subr.mxu1 %v643_v33 }
 0x2db   :  { %749 = vmatpush1.msra.mxu1 %v642_v34 }
 0x2dc   :  { %750 = vmatprep.subr.mxu1 %v705_v35 }
 0x2dd   :  { %751 = vmatpush2.msra.mxu1 %v704_v36 }
 0x2de   :  { %752 = vmatprep.subr.mxu1 %v703_v37 }
 0x2df   :  { %753 = vmatpush2.msra.mxu1 %v702_v38 }
 0x2e0   :  { %754 = vmatprep.subr.mxu1 %v701_v39 }
 0x2e1   :  { %755 = vmatpush2.msra.mxu1 %v700_v0 }
 0x2e2   :  { %756 = vmatprep.subr.mxu1 %v699_v40 }
 0x2e3   :  { %757 = vmatpush2.msra.mxu1 %v698_v41 }
 0x2e4   :  { %758 = vmatprep.subr.mxu1 %v697_v42 }
 0x2e5   :  { %759 = vmatpush2.msra.mxu1 %v696_v43 }
 0x2e6   :  { %760 = vmatprep.subr.mxu1 %v695_v44 }
 0x2e7   :  { %761 = vmatpush2.msra.mxu1 %v694_v45 }
 0x2e8   :  { %762 = vmatprep.subr.mxu1 %v693_v46 }
 0x2e9   :  { %763 = vmatpush2.msra.mxu1 %v692_v47 }
 0x2ea   :  { %764 = vmatprep.subr.mxu1 %v691_v48 }
 0x2eb   :  { %765 = vmatpush2.msra.mxu1 %v690_v49 }
 0x2ec   :  { %766 = vmatprep.subr.mxu1 %v689_v50 }
 0x2ed   :  { %767 = vmatpush2.msra.mxu1 %v688_v51 }
 0x2ee   :  { %768 = vmatprep.subr.mxu1 %v687_v52 }
 0x2ef   :  { %769 = vmatpush2.msra.mxu1 %v686_v53 }
 0x2f0   :  { %770 = vmatprep.subr.mxu1 %v685_v54 }
 0x2f1   :  { %771 = vmatpush2.msra.mxu1 %v684_v55 }
 0x2f2   :  { %772 = vmatprep.subr.mxu1 %v683_v56 }
 0x2f3   :  { %773 = vmatpush2.msra.mxu1 %v682_v57 }
 0x2f4   :  { %774 = vmatprep.subr.mxu1 %v681_v63 }
 0x2f5   :  { %775 = vmatpush2.msra.mxu1 %v680_v1 }
 0x2f6   :  { %776 = vmatprep.subr.mxu1 %v679_v2 }
 0x2f7   :  { %777 = vmatpush2.msra.mxu1 %v678_v3 }
 0x2f8   :  { %778 = vmatprep.subr.mxu1 %v677_v4 }
 0x2f9   :  { %779 = vmatpush2.msra.mxu1 %v676_v5 }
 0x2fa   :  { %780 = vmatprep.subr.mxu1 %v675_v6 }
 0x2fb   :  { %781 = vmatpush2.msra.mxu1 %v674_v7 }
 0x37c   :  { %v520_v59 = vpop.f32.mrf.mxu1 }
 0x37d   :  { %v521_v60 = vadd.f32 %v820_v58, %v520_v59 }
 0x37e   :  { %v1011_v61 = vpop.f32.mrf.mxu1 }
 0x37f   :  { %v524_v62 = vmax.f32 %v521_v60, 0.0 }
 0x381   :  { %634 = vmatmul.mubr.f32.vlgmr.msra.gmra.mxu0 %v524_v62 }
 0x441   :  { %v635_v15 = vpop.f32.mrf.mxu0 }
 0x442   :  { %v636_v16 = vadd.f32 %v635_v15, %v562_v13 }
 0x443   :  { %v637_v17 = vpop.f32.mrf.mxu0 }
 0x444   :  { %v638_v18 = vadd.f32 %v637_v17, %v566_v14  ;;  %v640_v20 = vmax.f32 %v636_v16, 0.0 }
 0x446   :  { %v641_v19 = vmax.f32 %v638_v18, 0.0 }
 0x448   :  { %782 = vmatprep.mubr.f32.mxu1 %v641_v19 }
 0x449   :  { %783 = vmatmul.mubr.f32.vlgmr.msra.gmra.mxu1 %v640_v20 }
 0x509   :  { %v784_v24 = vpop.f32.mrf.mxu1 }
 0x50a   :  { %v785_v25 = vadd.f32 %v784_v24, %v711_v22 }
 0x50b   :  { %v786_v26 = vpop.f32.mrf.mxu1 }
 0x50c   :  { %v789_v27 = vsub.f32 0.0, %v785_v25  ;;  %v787_v28 = vadd.f32 %v786_v26, %v715_v23 }
 0x50e   :  { %v791_v29 = vmul.f32 1.442695, %v789_v27  ;;  %v790_v30 = vsub.f32 0.0, %v787_v28 }
 0x510   :  { %1024 = vpow2.f32 %v791_v29  ;;  %v793_v31 = vmul.f32 1.442695, %v790_v30 }
 0x512   :  { %1026 = vpow2.f32 %v793_v31 }
 0x51d   :  { %v1025_v32 = vpop.eup %1024 }
 0x51e   :  { %v795_v33 = vadd.f32 1.0, %v1025_v32 }
 0x51f   :  { %v1027_v34 = vpop.eup %1026 }
 0x520   :  { %1028 = vrcp.f32 %v795_v33  ;;  %v796_v35 = vadd.f32 1.0, %v1027_v34 }
 0x522   :  { %1030 = vrcp.f32 %v796_v35 }
 0x52d   :  { %v1029_v36 = vpop.eup %1028 }
 0x52e   :  { %v799_v37 = vmax.f32 %v1029_v36, 0.0 }
 0x52f   :  { %v1031_v38 = vpop.eup %1030 }
 0x530   :  { %v801_v39 = vmin.f32 %v799_v37, 1.0  ;;  %v800_v0 = vmax.f32 %v1031_v38, 0.0 }
 0x532   :  { %803 = vst [vmem:[%s1385_s15] sm:$0xff] %v801_v39  ;;  %v802_v40 = vmin.f32 %v800_v0, 1.0 }
 0x534   :  { %804 = vst [vmem:[%s1385_s15 + $0x8] sm:$0xff] %v802_v40 }
 0x535   :  { %813 = vsyncpa [#allocation3], 1 }
 0x536   :  { %814 = vsyncpa [#allocation5], 1 }
 0x537   :  { %815 = vsyncpa [#allocation8], 1 }
 0x538   :  { %816 = vsyncpa [#allocation11], 1 }

</bundles_post_ra>
